<compile_context>
chip_gen: v7x
topology: tpu7x:2x2x1
jax: 0.10.0
libtpu: 0.0.40
codegen_flags: <defaults>
</compile_context>

<pallas_src>
import functools

import jax
import jax.numpy as jnp
from jax.experimental import pallas as pl
from jax.experimental.pallas import tpu as pltpu


def _round_up(x, m):
    return (x + m - 1) // m * m


def _tpu_generation():
    """Best-effort TPU generation sniff -> (is_v5, is_v7)."""
    try:
        kind = jax.devices()[0].device_kind.lower()
    except Exception:
        kind = ""
    return ("v5" in kind), ("v7" in kind)


def _apply_activation(z, activation, approx_sigmoid):
    if activation == "sigmoid":
        if approx_sigmoid:
            # exp and reciprocal both land on the EUP slot (no VALU divide).
            return pl.reciprocal(1.0 + jnp.exp(-z), approx=True)
        return 1.0 / (1.0 + jnp.exp(-z))
    if activation == "tanh":
        return jnp.tanh(z)
    if activation == "softmax":
        # The PyTorch module maps 'softmax' -> nn.Identity().
        return z
    raise ValueError(f"unknown activation: {activation}")


def _make_kernel_k1(activation, approx_sigmoid):
    """Fast path: single K step -> no accumulator scratch, no pl.when phases."""

    def kernel(x_ref, w_ref, b_ref, o_ref):
        z = jnp.dot(x_ref[...], w_ref[...],
                    preferred_element_type=jnp.float32) + b_ref[...]
        o_ref[...] = _apply_activation(z, activation, approx_sigmoid).astype(o_ref.dtype)

    return kernel


def _make_kernel_kn(activation, approx_sigmoid):
    """General path: f32 accumulation over the last ('arbitrary') K grid axis."""

    def kernel(x_ref, w_ref, b_ref, o_ref, acc_ref):
        @pl.when(pl.program_id(2) == 0)
        def _():
            acc_ref[...] = jnp.zeros_like(acc_ref)

        acc_ref[...] += jnp.dot(x_ref[...], w_ref[...],
                                preferred_element_type=jnp.float32)

        @pl.when(pl.program_id(2) == pl.num_programs(2) - 1)
        def _():
            z = acc_ref[...] + b_ref[...]
            o_ref[...] = _apply_activation(z, activation, approx_sigmoid).astype(o_ref.dtype)

    return kernel


def prepare_params(weight, bias, compute_dtype=jnp.bfloat16, _tk_cap=None):
    """One-time layout plumbing (call at parameter-init time, NOT per forward).

    weight: (out_dim, in_dim)  -- PyTorch nn.Linear convention.
    bias:   (out_dim,)

    Returns (w_p, b_p, meta):
      w_p  : (Kp, Np) pre-transposed, zero-padded, compute_dtype weight.
      b_p  : (1,  Np) zero-padded f32 bias row.
      meta : static kwargs for nn4g_layer_forward (out_dim, tn, tk).
    """
    out_dim, in_dim = weight.shape
    is_v5, is_v7 = _tpu_generation()

    # N tile: v5e MXU is 128 wide (128 already saturates columns);
    # v6e/v7x MXUs are 256 wide -> 256-wide lane-dense output tiles.
    tn_target = 128 if is_v5 else 256
    tn = min(tn_target, _round_up(out_dim, 128))

    # K tile: large (fewer grid steps, W streamed in big slabs), capped lower
    # on v7x so the double-buffered working set respects its 64 MiB VMEM.
    tk_cap = _tk_cap if _tk_cap is not None else (512 if is_v7 else 1024)
    tk = min(tk_cap, _round_up(in_dim, 128))

    Np = _round_up(out_dim, tn)
    Kp = _round_up(in_dim, tk)

    # Cast first (halves the pad traffic), then pad.  Zeros contribute nothing
    # to the matmul; padded output columns are sliced off in the forward.
    w_p = jnp.pad(weight.T.astype(compute_dtype),
                  ((0, Kp - in_dim), (0, Np - out_dim)))
    b_p = jnp.pad(bias.astype(jnp.float32).reshape(1, out_dim),
                  ((0, 0), (0, Np - out_dim)))
    meta = dict(out_dim=out_dim, tn=tn, tk=tk)
    return w_p, b_p, meta


@functools.partial(
    jax.jit,
    static_argnames=("out_dim", "tn", "tk", "activation", "approx_sigmoid"),
)
def nn4g_layer_forward(x, w_p, b_p, *, out_dim, tn, tk,
                       activation="sigmoid", approx_sigmoid=True):
    """Pallas implementation of Layer.forward: f(x @ W^T + b).

    x    : (B, in_dim) activations.
    w_p  : (Kp, Np) prepared weight from prepare_params().
    b_p  : (1,  Np) prepared bias from prepare_params().
    """
    B, in_dim = x.shape
    Kp, Np = w_p.shape
    compute_dtype = w_p.dtype
    sub = 16 if compute_dtype == jnp.bfloat16 else 8

    is_v5, is_v7 = _tpu_generation()

    # M tile: as large as the batch allows (per-grid-step overhead ~0.35 us and
    # W is re-streamed Mp/tm times), still far inside the VMEM budget.
    tm = min(512, _round_up(B, sub))
    Mp = _round_up(B, tm)

    # v7x shards 'parallel' axes across its 2 TensorCores: make sure the
    # parallel grid has >= 2 blocks when the problem is big enough to split.
    if is_v7 and (Mp // tm) * (Np // tn) < 2:
        if tm % (2 * sub) == 0:
            tm //= 2
        elif tn >= 256:
            tn //= 2

    # Pad x only when needed (avoids an extra HBM pass for aligned shapes);
    # the compute-dtype cast fuses with the pad when both are present.
    x_p = x.astype(compute_dtype)
    if (Mp, Kp) != (B, in_dim):
        x_p = jnp.pad(x_p, ((0, Mp - B), (0, Kp - in_dim)))

    k_steps = Kp // tk
    grid_m, grid_n = Mp // tm, Np // tn

    # Generation-aware VMEM cap: v5e/v6e have 128 MiB physical, v7x only 64.
    if is_v7:
        vmem_limit = 48 * 1024 * 1024
    elif is_v5:
        vmem_limit = 96 * 1024 * 1024
    else:
        vmem_limit = 64 * 1024 * 1024

    if k_steps == 1:
        grid_spec = pltpu.PrefetchScalarGridSpec(
            num_scalar_prefetch=0,
            grid=(grid_m, grid_n),
            in_specs=[
                pl.BlockSpec((tm, tk), lambda i, j: (i, 0)),   # x
                pl.BlockSpec((tk, tn), lambda i, j: (0, j)),   # W^T (prepared)
                pl.BlockSpec((1, tn), lambda i, j: (0, j)),    # bias
            ],
            out_specs=pl.BlockSpec((tm, tn), lambda i, j: (i, j)),
        )
        kernel = _make_kernel_k1(activation, approx_sigmoid)
        dim_sem = ("parallel", "parallel")
    else:
        # Deeper buffering on the streamed weight when K is long and per-step
        # compute may be too short to hide the tile DMA.
        w_idx = lambda i, j, k: (k, j)
        w_spec = pl.BlockSpec((tk, tn), w_idx)
        if k_steps >= 4:
            try:
                w_spec = pl.BlockSpec((tk, tn), w_idx,
                                      pipeline_mode=pl.Buffered(3))
            except Exception:
                pass  # fall back to default double buffering

        grid_spec = pltpu.PrefetchScalarGridSpec(
            num_scalar_prefetch=0,
            grid=(grid_m, grid_n, k_steps),
            in_specs=[
                pl.BlockSpec((tm, tk), lambda i, j, k: (i, k)),  # x
                w_spec,                                          # W^T (prepared)
                pl.BlockSpec((1, tn), lambda i, j, k: (0, j)),   # bias
            ],
            out_specs=pl.BlockSpec((tm, tn), lambda i, j, k: (i, j)),
            scratch_shapes=[pltpu.VMEM((tm, tn), jnp.float32)],
        )
        kernel = _make_kernel_kn(activation, approx_sigmoid)
        dim_sem = ("parallel", "parallel", "arbitrary")

    out_p = pl.pallas_call(
        kernel,
        out_shape=jax.ShapeDtypeStruct((Mp, Np), x.dtype),
        grid_spec=grid_spec,
        compiler_params=pltpu.CompilerParams(
            dimension_semantics=dim_sem,
            vmem_limit_bytes=vmem_limit,
        ),
    )(x_p, w_p, b_p)

    # Slice away padding: lane-dense compute, exact user-visible shape.
    return out_p[:B, :out_dim]


if __name__ == "__main__":
    # --- Small shapes consistent with an NN4G layer (K == 1 fast path) -------
    B, in_dim, out_dim = 8, 32, 16
    weight_std = 0.3

    key = jax.random.PRNGKey(0)
    kx, kw, kb, kx2, kw2, kb2 = jax.random.split(key, 6)

    x = jax.random.normal(kx, (B, in_dim), dtype=jnp.float32)
    # Deterministic init matching nn.init.normal_(std=weight_std).
    weight = weight_std * jax.random.normal(kw, (out_dim, in_dim), dtype=jnp.float32)
    bias = weight_std * jax.random.normal(kb, (out_dim,), dtype=jnp.float32)

    # One-time layout plumbing (transpose + pad + bf16 cast of W, pad of b).
    w_p, b_p, meta = prepare_params(weight, bias)

    out = nn4g_layer_forward(x, w_p, b_p, activation="sigmoid", **meta)
    out = jax.block_until_ready(out)
    assert out.shape == (B, out_dim)

    # Reference with bf16-quantized operands (what the MXU sees) -> tight check.
    xq = x.astype(jnp.bfloat16).astype(jnp.float32)
    wq = weight.astype(jnp.bfloat16).astype(jnp.float32)
    z_ref = xq @ wq.T + bias[None, :]
    ref_sig = jax.nn.sigmoid(z_ref)
    assert jnp.allclose(out, ref_sig, atol=5e-3, rtol=5e-3), float(
        jnp.max(jnp.abs(out - ref_sig)))
    # Loose check against exact f32 module semantics (bf16 inputs + approx rcp).
    ref_f32 = jax.nn.sigmoid(x @ weight.T + bias[None, :])
    assert jnp.allclose(out, ref_f32, atol=3e-2, rtol=3e-2), float(
        jnp.max(jnp.abs(out - ref_f32)))

    # Other activation paths of the module ('softmax' -> Identity).
    out_t = jax.block_until_ready(
        nn4g_layer_forward(x, w_p, b_p, activation="tanh", **meta))
    assert jnp.allclose(out_t, jnp.tanh(z_ref), atol=5e-3, rtol=5e-3)
    out_i = jax.block_until_ready(
        nn4g_layer_forward(x, w_p, b_p, activation="softmax", **meta))
    assert jnp.allclose(out_i, z_ref, atol=5e-3, rtol=5e-3)

    # --- Exercise the multi-K accumulator path (small but K-tiled) -----------
    in_dim2, out_dim2 = 256, 20
    x2 = jax.random.normal(kx2, (B, in_dim2), dtype=jnp.float32)
    weight2 = weight_std * jax.random.normal(kw2, (out_dim2, in_dim2), dtype=jnp.float32)
    bias2 = weight_std * jax.random.normal(kb2, (out_dim2,), dtype=jnp.float32)
    w2_p, b2_p, meta2 = prepare_params(weight2, bias2, _tk_cap=128)  # -> 2 K steps
    out2 = jax.block_until_ready(
        nn4g_layer_forward(x2, w2_p, b2_p, activation="sigmoid", **meta2))
    x2q = x2.astype(jnp.bfloat16).astype(jnp.float32)
    w2q = weight2.astype(jnp.bfloat16).astype(jnp.float32)
    ref2 = jax.nn.sigmoid(x2q @ w2q.T + bias2[None, :])
    assert out2.shape == (B, out_dim2)
    assert jnp.allclose(out2, ref2, atol=5e-3, rtol=5e-3), float(
        jnp.max(jnp.abs(out2 - ref2)))

    print("KERNEL_OK")
</pallas_src>

<mosaic_0001>
module attributes {stable_mosaic.version = 11 : i64} {
  func.func @kernel(%arg0: i32, %arg1: i32, %arg2: memref<16x128xbf16, #tpu.memory_space<vmem>>, %arg3: memref<128x128xbf16, #tpu.memory_space<vmem>>, %arg4: memref<1x128xf32, #tpu.memory_space<vmem>>, %arg5: memref<16x128xf32, #tpu.memory_space<vmem>>) attributes {dimension_semantics = [#tpu.dimension_semantics<parallel>, #tpu.dimension_semantics<parallel>], iteration_bounds = array<i64: 1, 1>, scalar_prefetch = 0 : i64, scratch_operands = 0 : i64, tpu.core_type = #tpu.core_type<tc>, window_params = [{transform_indices = @transform_0, window_bounds = array<i64: 16, 128>}, {transform_indices = @transform_1, window_bounds = array<i64: 128, 128>}, {transform_indices = @transform_2, window_bounds = array<i64: 1, 128>}, {transform_indices = @transform_3, window_bounds = array<i64: 16, 128>}]} {
    %c0 = arith.constant 0 : index
    %c0_0 = arith.constant 0 : index
    %0 = vector.load %arg2[%c0, %c0_0] : memref<16x128xbf16, #tpu.memory_space<vmem>>, vector<16x128xbf16>
    %c0_1 = arith.constant 0 : index
    %c0_2 = arith.constant 0 : index
    %1 = vector.load %arg3[%c0_1, %c0_2] : memref<128x128xbf16, #tpu.memory_space<vmem>>, vector<128x128xbf16>
    %cst = arith.constant dense<0.000000e+00> : vector<16x128xf32>
    %2 = tpu.matmul %0, %1, %cst {dimension_numbers = #tpu.dot_dimension_numbers<[1], [0], [0], [1], [0, 0, 1, 1], [], []>} : vector<16x128xbf16>, vector<128x128xbf16>, vector<16x128xf32> -> vector<16x128xf32>
    %c0_3 = arith.constant 0 : index
    %c0_4 = arith.constant 0 : index
    %3 = vector.load %arg4[%c0_3, %c0_4] : memref<1x128xf32, #tpu.memory_space<vmem>>, vector<1x128xf32>
    %4 = vector.broadcast %3 : vector<1x128xf32> to vector<16x128xf32>
    %5 = arith.addf %2, %4 : vector<16x128xf32>
    %cst_5 = arith.constant 0.000000e+00 : f32
    %6 = vector.broadcast %cst_5 : f32 to vector<16x128xf32>
    %7 = arith.subf %6, %5 : vector<16x128xf32>
    %8 = math.exp %7 : vector<16x128xf32>
    %cst_6 = arith.constant 1.000000e+00 : f32
    %9 = vector.broadcast %cst_6 : f32 to vector<16x128xf32>
    %10 = arith.addf %9, %8 : vector<16x128xf32>
    %11 = tpu.reciprocal %10 {approx = true} : vector<16x128xf32> -> vector<16x128xf32>
    %c0_7 = arith.constant 0 : index
    %c0_8 = arith.constant 0 : index
    %12 = vector.load %arg5[%c0_7, %c0_8] : memref<16x128xf32, #tpu.memory_space<vmem>>, vector<16x128xf32>
    tpu.vector_store %arg5[%c0_7, %c0_8], %11 {strides = array<i32>} : memref<16x128xf32, #tpu.memory_space<vmem>>, vector<16x128xf32>,
    return
  }
  func.func @transform_0(%arg0: i32, %arg1: i32) -> (i32, i32) {
    %c0_i32 = arith.constant 0 : i32
    %c0_i32_0 = arith.constant 0 : i32
    return %arg0, %c0_i32 : i32, i32
  }
  func.func @transform_1(%arg0: i32, %arg1: i32) -> (i32, i32) {
    %c0_i32 = arith.constant 0 : i32
    %c0_i32_0 = arith.constant 0 : i32
    return %c0_i32, %arg1 : i32, i32
  }
  func.func @transform_2(%arg0: i32, %arg1: i32) -> (i32, i32) {
    %c0_i32 = arith.constant 0 : i32
    %c0_i32_0 = arith.constant 0 : i32
    return %c0_i32, %arg1 : i32, i32
  }
  func.func @transform_3(%arg0: i32, %arg1: i32) -> (i32, i32) {
    %c0_i32 = arith.constant 0 : i32
    return %arg0, %arg1 : i32, i32
  }
}

</mosaic_0001>

<bundles_post_ra>
// kernel: nn4g_layer_forward.1
= control target key start
LH: loop header
LB: loop body
LE: loop exit
PB: predicated region body
PF: predicated region fallthrough
CT: control target
= control target key end

     0   :  { %8 = vsyncpa [#allocation3], 0  ;;  %s450_s0 = inlined_call_operand.hbm [shape: bf16[16,128], index: 0, kind: input, shape index: {}]   ;;  %s451_s1 = inlined_call_operand.hbm [shape: bf16[128,128], index: 1, kind: input, shape index: {}]   ;;  %s452_s2 = inlined_call_operand.hbm [shape: f32[1,128], index: 2, kind: input, shape index: {}]   ;;  %s453_s3 = inlined_call_operand.hbm [shape: f32[16,128], index: 3, kind: output, shape index: {}]  }
   0x1   :  { %9 = vsyncpa [#allocation6], 0 }
   0x2   :  { %10 = vsyncpa [#allocation4], 0  ;;  %s365_s12 = smov [#allocation5]   ;;  %s366_s14 = smov [#allocation2]  }
   0x3   :  { %s28_s13 = sshll.u32 %s365_s12, 4  ;;  %s16_s15 = sshll.u32 %s366_s14, 4  ;;  %s29_s13 = int_to_ptr.vmem [resolvable:$true] %s28_s13  ;;  %s395_s15 = int_to_ptr.vmem [resolvable:$true] %s16_s15 }
   0x4   :  { %s271_s18 = scalar_lea.hbm %s451_s1, 1024 }
   0x5   :  { %p272_p0 = scmp.ne.s32.totalorder %s451_s1, %s271_s18  ;;  %p275_p1 = scmp.lt.u32.totalorder %s271_s18, %s451_s1 }
   0x7   :  { %p277_p2 = pnand %p275_p1, %p272_p0 }
   0x9   :  { %280 = shalt.err (!%p277_p2)
}
   0xa   :  { %s281_s23 = scalar_lea.vmem %s29_s13, 1024  ;;  %p286_p4 = scmp.lt.s32.totalorder %s29_s13, %s29_s13 }
   0xb   :  { %p282_p3 = scmp.ne.s32.totalorder %s29_s13, %s281_s23  ;;  %p287_p5 = scmp.lt.s32.totalorder %s281_s23, %s281_s23 }
   0xd   :  { %p288_p6 = por %p287_p5, %p286_p4 }
   0xf   :  { %p289_p7 = pnand %p288_p6, %p282_p3 }
  0x11   :  { %292 = shalt.err (!%p289_p7)
}
  0x12   :  { %s367_s24 = smov 64   ;;  %s368_s25 = smov 4  }
  0x13   :  { %34 = dma.hbm_to_vmem [thread:$0]  %s451_s1, 1024, %s29_s13, [#allocation6], %s367_s24, %s367_s24, %s368_s25  }
  0x14   :  { %s293_s30 = scalar_lea.hbm %s450_s0, 128 }
  0x15   :  { %p294_p8 = scmp.ne.s32.totalorder %s450_s0, %s293_s30  ;;  %p297_p9 = scmp.lt.u32.totalorder %s293_s30, %s450_s0 }
  0x17   :  { %p299_p10 = pnand %p297_p9, %p294_p8 }
  0x19   :  { %302 = shalt.err (!%p299_p10)
}
  0x1a   :  { %s303_s8 = scalar_lea.vmem %s395_s15, 128  ;;  %p308_p12 = scmp.lt.s32.totalorder %s395_s15, %s395_s15 }
  0x1b   :  { %p304_p11 = scmp.ne.s32.totalorder %s395_s15, %s303_s8  ;;  %p309_p13 = scmp.lt.s32.totalorder %s303_s8, %s303_s8 }
  0x1d   :  { %p310_p0 = por %p309_p13, %p308_p12 }
  0x1f   :  { %p311_p1 = pnand %p310_p0, %p304_p11 }
  0x21   :  { %314 = shalt.err (!%p311_p1)
}
  0x22   :  { %22 = dma.hbm_to_vmem [thread:$0]  %s450_s0, 128, %s395_s15, [#allocation3], %s367_s24, %s367_s24, %s368_s25  }
  0x23   :  { %s369_s10 = smov [#allocation7]   ;;  %s315_s14 = scalar_lea.hbm %s452_s2, 16 }
  0x24   :  { %s41_s11 = sshll.u32 %s369_s10, 4  ;;  %p316_p2 = scmp.ne.s32.totalorder %s452_s2, %s315_s14  ;;  %s42_s11 = int_to_ptr.vmem [resolvable:$true] %s41_s11 }
  0x25   :  { %p319_p3 = scmp.lt.u32.totalorder %s315_s14, %s452_s2 }
  0x27   :  { %p321_p4 = pnand %p319_p3, %p316_p2 }
  0x29   :  { %324 = shalt.err (!%p321_p4)
}
  0x2a   :  { %s325_s20 = scalar_lea.vmem %s42_s11, 16  ;;  %s329_s0 = scalar_lea.vmem %s42_s11, 32 }
  0x2b   :  { %p326_p5 = scmp.ne.s32.totalorder %s42_s11, %s325_s20  ;;  %p330_p6 = scmp.lt.s32.totalorder %s42_s11, %s42_s11 }
  0x2c   :  { %p331_p7 = scmp.lt.s32.totalorder %s329_s0, %s325_s20 }
  0x2e   :  { %p332_p8 = por %p331_p7, %p330_p6 }
  0x30   :  { %p333_p9 = pnand %p332_p8, %p326_p5 }
  0x32   :  { %336 = shalt.err (!%p333_p9)
}
  0x33   :  { %44 = dma.hbm_to_vmem [thread:$0]  %s452_s2, 16, %s42_s11, [#allocation6]  }
  0x34   :  { %359 = dma.done.wait [#allocation3], 128  }
  0x35   :  { %360 = vsyncadd [#allocation3], 4294967168 }
  0x36   :  { %361 = dma.done.wait [#allocation6], 1040  }
  0x37   :  { %362 = vsyncadd [#allocation6], 4294966256  ;;  %v370_v0 = vmov 0.0   ;;  %vm371_vm0 = vmmov 0   ;;  %v254_v1 = vld [vmem:[#allocation5] sm:$0xff]   ;;  %v255_v2 = vld [vmem:[#allocation5 + $0x8] sm:$0xff]  }
  0x38   :  { %224 = vmatprep.subr.bf16.mxu0 %v370_v0  ;;  %240 = vmatprep.mubr.msk.bf16.mxu0 %vm371_vm0, %v370_v0  ;;  %v256_v3 = vld [vmem:[#allocation5 + $0x10] sm:$0xff]   ;;  %v257_v4 = vld [vmem:[#allocation5 + $0x18] sm:$0xff]   ;;  %v258_v5 = vld [vmem:[#allocation5 + $0x20] sm:$0xff]   ;;  %s372_s2 = smov [#allocation8]  }
  0x39   :  { %225 = vmatpush3.bf16.msra.mxu0 %v254_v1  ;;  %v259_v6 = vld [vmem:[#allocation5 + $0x28] sm:$0xff]   ;;  %v260_v7 = vld [vmem:[#allocation5 + $0x30] sm:$0xff]   ;;  %v261_v8 = vld [vmem:[#allocation5 + $0x38] sm:$0xff]   ;;  %s192_s22 = sshll.u32 %s372_s2, 4  ;;  %s193_s22 = int_to_ptr.vmem [resolvable:$true] %s192_s22 }
  0x3a   :  { %226 = vmatprep.subr.bf16.mxu0 %v370_v0  ;;  %v262_v9 = vld [vmem:[#allocation2] sm:$0xff]   ;;  %v205_v10 = vld [vmem:[#allocation7] ss:$0 sm:$0xff]  ;;  %s337_s23 = scalar_lea.vmem %s193_s22, 256  ;;  %p342_p11 = scmp.lt.s32.totalorder %s193_s22, %s193_s22 }
  0x3b   :  { %p338_p10 = scmp.ne.s32.totalorder %s193_s22, %s337_s23  ;;  %p343_p12 = scmp.lt.s32.totalorder %s337_s23, %s337_s23 }
  0x3d   :  { %227 = vmatpush3.bf16.msra.mxu0 %v255_v2  ;;  %p344_p13 = por %p343_p12, %p342_p11 }
  0x3e   :  { %228 = vmatprep.subr.bf16.mxu0 %v370_v0 }
  0x3f   :  { %p345_p0 = pnand %p344_p13, %p338_p10 }
  0x41   :  { %229 = vmatpush3.bf16.msra.mxu0 %v256_v3 }
  0x42   :  { %230 = vmatprep.subr.bf16.mxu0 %v370_v0 }
  0x45   :  { %231 = vmatpush3.bf16.msra.mxu0 %v257_v4 }
  0x46   :  { %232 = vmatprep.subr.bf16.mxu0 %v370_v0 }
  0x49   :  { %233 = vmatpush3.bf16.msra.mxu0 %v258_v5 }
  0x4a   :  { %234 = vmatprep.subr.bf16.mxu0 %v370_v0 }
  0x4d   :  { %235 = vmatpush3.bf16.msra.mxu0 %v259_v6 }
  0x4e   :  { %236 = vmatprep.subr.bf16.mxu0 %v370_v0 }
  0x51   :  { %237 = vmatpush3.bf16.msra.mxu0 %v260_v7 }
  0x52   :  { %238 = vmatprep.subr.bf16.mxu0 %v370_v0 }
  0x55   :  { %239 = vmatpush3.bf16.msra.mxu0 %v261_v8 }
  0x58   :  { %241 = vmatmul.mubr.bf16.vlgmr.msra.gmra.mrb[0].mxu0 %v262_v9 }
 0x12b   :  { %v168_v11 = vpop.f32.mrb[0].mxu0 }
 0x12c   :  { %v169_v12 = vadd.f32 %v205_v10, %v168_v11  ;;  %v242_v13 = vpop.f32.mrb[1].mxu0 }
 0x12d   :  { %v171_v14 = vpop.f32.mrb[2].mxu0 }
 0x12e   :  { %v175_v15 = vsub.f32 0.0, %v169_v12  ;;  %v172_v16 = vadd.f32 %v205_v10, %v171_v14  ;;  %v243_v17 = vpop.f32.mrb[3].mxu0 }
 0x130   :  { %v177_v18 = vmul.f32 1.442695, %v175_v15  ;;  %v176_v19 = vsub.f32 0.0, %v172_v16 }
 0x132   :  { %263 = vpow2.f32 %v177_v18  ;;  %v179_v20 = vmul.f32 1.442695, %v176_v19 }
 0x134   :  { %265 = vpow2.f32 %v179_v20 }
 0x13c   :  { %v264_v21 = vpop.eup %263 }
 0x13d   :  { %v181_v22 = vadd.f32 1.0, %v264_v21 }
 0x13e   :  { %v266_v23 = vpop.eup %265 }
 0x13f   :  { %267 = vrcp.f32 %v181_v22  ;;  %v182_v24 = vadd.f32 1.0, %v266_v23 }
 0x141   :  { %269 = vrcp.f32 %v182_v24 }
 0x149   :  { %v268_v25 = vpop.eup %267 }
 0x14a   :  { %185 = vst [vmem:[#allocation8] sm:$0xff] %v268_v25 }
 0x14b   :  { %v270_v26 = vpop.eup %269 }
 0x14c   :  { %186 = vst [vmem:[#allocation8 + $0x8] sm:$0xff] %v270_v26 }
 0x14d   :  { %348 = shalt.err (!%p345_p0)
}
 0x14e   :  { %s349_s26 = scalar_lea.hbm %s453_s3, 256 }
 0x14f   :  { %p350_p1 = scmp.ne.s32.totalorder %s453_s3, %s349_s26  ;;  %p353_p2 = scmp.lt.u32.totalorder %s349_s26, %s453_s3 }
 0x151   :  { %p355_p3 = pnand %p353_p2, %p350_p1 }
 0x153   :  { %358 = shalt.err (!%p355_p3)
}
 0x154   :  { %s373_s4 = smov 128   ;;  %s374_s5 = smov 8  }
 0x155   :  { %198 = dma.vmem_to_hbm [thread:$0]  %s193_s22, 256, %s453_s3, [#allocation4], %s373_s4, %s373_s4, %s374_s5  }
 0x156   :  { %363 = dma.done.wait [#allocation4], 256  }
 0x157   :  { %364 = vsyncadd [#allocation4], 4294967040 }
 0x158   :  { %202 = vsyncpa [#allocation3], 1 }
 0x159   :  { %203 = vsyncpa [#allocation6], 1 }
 0x15a   :  { %204 = vsyncpa [#allocation4], 1 }

</bundles_post_ra>
